<compile_context>
chip_gen: v6e
topology: v6e:2x2x1
jax: 0.10.0
libtpu: 0.0.40
codegen_flags: <defaults>
</compile_context>

<pallas_src>
import functools

import numpy as np
import jax
import jax.numpy as jnp
from jax import lax
from jax.experimental import pallas as pl
from jax.experimental.pallas import tpu as pltpu


VMEM_LIMIT_BYTES = 48 * 1024 * 1024   # explicit scoped-VMEM budget (headroom under v7x 64 MiB)


# --------------------------------------------------------------------------------------
# Pallas kernels
# --------------------------------------------------------------------------------------

def _linear_kernel(x_ref, w_ref, b_ref, o_ref):
    """y = x @ w + b   (bf16 MXU operands, f32 accumulation, bf16 output)."""
    acc = jnp.dot(x_ref[...], w_ref[...], preferred_element_type=jnp.float32) + b_ref[...]
    o_ref[...] = acc.astype(o_ref.dtype)


def _head_kernel(x_ref, g_ref, w_ref, c1_ref, c2_ref, o_ref,
                 acc_ref, sx_ref, sx2_ref, *, k_total, eps):
    """K-tiled fused LayerNorm + Linear head.

    Uses the streaming decomposition
        y = s * (x*g) @ W  -  (mu*s) * (g @ W)  +  (beta @ W + b)
    with per-row mu = mean(x), s = rsqrt(var(x)+eps) accumulated over K tiles.
    c1 = g @ W and c2 = beta @ W + b are precomputed constants (inputs).
    grid = (row_tiles ["parallel"], k_tiles ["arbitrary"]).
    """
    k = pl.program_id(1)

    @pl.when(k == 0)
    def _():
        acc_ref[...] = jnp.zeros_like(acc_ref)
        sx_ref[...] = jnp.zeros_like(sx_ref)
        sx2_ref[...] = jnp.zeros_like(sx2_ref)

    x = x_ref[...]                                   # (tm, tk) f32
    g = g_ref[...]                                   # (1, tk)  f32
    sx_ref[...] += jnp.sum(x, axis=-1, keepdims=True)
    sx2_ref[...] += jnp.sum(x * x, axis=-1, keepdims=True)
    acc_ref[...] += jnp.dot((x * g).astype(jnp.bfloat16), w_ref[...],
                            preferred_element_type=jnp.float32)

    @pl.when(k == pl.num_programs(1) - 1)
    def _():
        inv_k = 1.0 / k_total
        mu = sx_ref[...] * inv_k
        var = jnp.maximum(sx2_ref[...] * inv_k - mu * mu, 0.0)
        s = lax.rsqrt(var + eps)
        o_ref[...] = s * acc_ref[...] - (mu * s) * c1_ref[...] + c2_ref[...]


def _reservoir_group_kernel(x_ref, w_in_ref, w_res_ref, w_out_ref, b_out_ref,
                            ln_g_ref, ln_b_ref, ff_w1_ref, ff_b1_ref,
                            ff_w2_ref, ff_b2_ref, o_ref, *scratch,
                            tile_n, b_pad, lpg, leaky, eps, unroll):
    """`lpg` reservoir layers (+ Residual(PreNorm(FeedForward))) over one time tile.

    grid = (depth // lpg ["parallel"], n_time_tiles ["arbitrary"]).

    x_ref      : (tile_n*b_pad, dim)  bf16, time-major (row = t*b_pad + batch)
    w_*_ref    : (lpg, ...) depth-group slices of the stacked per-layer weights (bf16 matmul
                 weights, f32 biases / LN params)
    o_ref      : (lpg, tile_n*b_pad, dim) f32 per-branch outputs (averaged in the wrapper)
    scratch    : lpg x u  (tile_n, b_pad, units) f32   hoisted x @ W_in for this tile
                 lpg x h  (tile_n, b_pad, units) f32   hidden states of this tile
                 lpg x hc (b_pad, units)         f32   carried state across time tiles
    """
    u_refs = scratch[:lpg]
    h_all_refs = scratch[lpg:2 * lpg]
    h_carry_refs = scratch[2 * lpg:]

    t_idx = pl.program_id(1)
    units = u_refs[0].shape[-1]
    tile_rows = tile_n * b_pad

    # Reset the carried reservoir state at the first time tile of each depth group.
    @pl.when(t_idx == 0)
    def _():
        for l in range(lpg):
            h_carry_refs[l][...] = jnp.zeros((b_pad, units), jnp.float32)

    x = x_ref[...]                                               # (tile_rows, dim) bf16

    # Hoisted input projection for every timestep of this tile (one big MXU pass per layer).
    for l in range(lpg):
        u_refs[l][...] = jnp.dot(
            x, w_in_ref[l], preferred_element_type=jnp.float32
        ).reshape(tile_n, b_pad, units)

    # Recurrence weights loaded once per grid step.
    w_res = [w_res_ref[l] for l in range(lpg)]                   # (units, units) bf16

    # Serial recurrence: `lpg` independent chains interleaved per step (ILP hides MXU/EUP
    # latency of each chain); partially unrolled for LLO visibility without code blow-up.
    def step(t, hs):
        new_hs = []
        for l in range(lpg):
            pre = u_refs[l][t] + jnp.dot(hs[l].astype(jnp.bfloat16), w_res[l],
                                         preferred_element_type=jnp.float32)
            if leaky == 1.0:
                h_new = jnp.tanh(pre)
            else:
                h_new = (1.0 - leaky) * hs[l] + leaky * jnp.tanh(pre)
            h_all_refs[l][t] = h_new
            new_hs.append(h_new)
        return tuple(new_hs)

    hs0 = tuple(h_carry_refs[l][...] for l in range(lpg))
    hs = lax.fori_loop(0, tile_n, step, hs0, unroll=unroll)
    for l in range(lpg):
        h_carry_refs[l][...] = hs[l]

    # Batched readout + fused Residual(PreNorm(FeedForward)) per layer of the group.
    for l in range(lpg):
        h_flat = h_all_refs[l][...].reshape(tile_rows, units).astype(jnp.bfloat16)
        res = jnp.dot(h_flat, w_out_ref[l],
                      preferred_element_type=jnp.float32) + b_out_ref[l]     # (tile_rows, dim)

        mu = jnp.mean(res, axis=-1, keepdims=True)
        var = jnp.mean(jnp.square(res - mu), axis=-1, keepdims=True)
        normed = (res - mu) * lax.rsqrt(var + eps) * ln_g_ref[l] + ln_b_ref[l]

        z1 = jnp.dot(normed.astype(jnp.bfloat16), ff_w1_ref[l],
                     preferred_element_type=jnp.float32) + ff_b1_ref[l]
        g1 = jax.nn.gelu(z1, approximate=False)                  # exact-erf GELU (torch default)
        z2 = jnp.dot(g1.astype(jnp.bfloat16), ff_w2_ref[l],
                     preferred_element_type=jnp.float32) + ff_b2_ref[l]

        o_ref[l] = res + z2                                      # residual


# --------------------------------------------------------------------------------------
# pallas_call wrappers
# --------------------------------------------------------------------------------------

def linear_pallas(x, w, b, *, out_dtype=jnp.bfloat16, tm=256):
    """Row-tiled y = x @ w + b.  Rows independent -> 'parallel' grid axis."""
    M, K = x.shape
    N = w.shape[1]
    tm = min(tm, M)
    return pl.pallas_call(
        _linear_kernel,
        grid=(pl.cdiv(M, tm),),
        in_specs=[pl.BlockSpec((tm, K), lambda i: (i, 0)),
                  pl.BlockSpec((K, N), lambda i: (0, 0)),
                  pl.BlockSpec((1, N), lambda i: (0, 0))],
        out_specs=pl.BlockSpec((tm, N), lambda i: (i, 0)),
        out_shape=jax.ShapeDtypeStruct((M, N), out_dtype),
        compiler_params=pltpu.CompilerParams(dimension_semantics=("parallel",)),
    )(x, w, b)


def head_pallas(x, g, w, c1, c2, *, eps=1e-5):
    """Fused LayerNorm + Linear head, K-tiled so the head weight is pipelined, not resident."""
    M, K = x.shape
    Np = w.shape[1]
    if K % 256 == 0:
        tk = 256
    elif K % 128 == 0:
        tk = 128
    else:
        tk = K
    n_k = K // tk
    tm = min(M, 128)
    return pl.pallas_call(
        functools.partial(_head_kernel, k_total=K, eps=eps),
        grid=(pl.cdiv(M, tm), n_k),
        in_specs=[pl.BlockSpec((tm, tk), lambda i, k: (i, k)),
                  pl.BlockSpec((1, tk), lambda i, k: (0, k)),
                  pl.BlockSpec((tk, Np), lambda i, k: (k, 0)),
                  pl.BlockSpec((1, Np), lambda i, k: (0, 0)),
                  pl.BlockSpec((1, Np), lambda i, k: (0, 0))],
        out_specs=pl.BlockSpec((tm, Np), lambda i, k: (i, 0)),
        out_shape=jax.ShapeDtypeStruct((M, Np), jnp.float32),
        scratch_shapes=[pltpu.VMEM((tm, Np), jnp.float32),
                        pltpu.VMEM((tm, 1), jnp.float32),
                        pltpu.VMEM((tm, 1), jnp.float32)],
        compiler_params=pltpu.CompilerParams(
            dimension_semantics=("parallel", "arbitrary"),
            vmem_limit_bytes=VMEM_LIMIT_BYTES),
    )(x, g, w, c1, c2)


def reservoir_stack_pallas(x, params, *, n, b_pad, leaky, eps=1e-5, tile_n=None):
    """All `depth` reservoir+FF branches in one pallas_call; returns per-branch outputs."""
    nb_rows, dim = x.shape                      # nb_rows = n * b_pad
    depth = params["w_in"].shape[0]
    units = params["w_in"].shape[-1]
    mlp_dim = params["ff_w1"].shape[-1]

    if tile_n is None:                          # largest divisor of n that is <= 32 timesteps
        tile_n = 1
        for cand in range(min(n, 32), 0, -1):
            if n % cand == 0:
                tile_n = cand
                break
    assert n % tile_n == 0
    n_tiles = n // tile_n
    tile_rows = tile_n * b_pad

    lpg = 2 if depth % 2 == 0 else 1            # layers interleaved per grid step
    n_groups = depth // lpg

    kernel = functools.partial(
        _reservoir_group_kernel, tile_n=tile_n, b_pad=b_pad, lpg=lpg,
        leaky=float(leaky), eps=eps, unroll=min(4, tile_n))

    def wspec(tail):
        return pl.BlockSpec((lpg,) + tail, lambda g, t: (g, 0, 0))

    scratch = ([pltpu.VMEM((tile_n, b_pad, units), jnp.float32) for _ in range(lpg)]   # u
               + [pltpu.VMEM((tile_n, b_pad, units), jnp.float32) for _ in range(lpg)] # h_all
               + [pltpu.VMEM((b_pad, units), jnp.float32) for _ in range(lpg)])        # h carry

    return pl.pallas_call(
        kernel,
        grid=(n_groups, n_tiles),
        in_specs=[
            pl.BlockSpec((tile_rows, dim), lambda g, t: (t, 0)),   # x (bf16, time tile)
            wspec((dim, units)),                                   # w_in
            wspec((units, units)),                                 # w_res
            wspec((units, dim)),                                   # w_out
            wspec((1, dim)),                                       # b_out
            wspec((1, dim)),                                       # ln_g
            wspec((1, dim)),                                       # ln_b
            wspec((dim, mlp_dim)),                                 # ff_w1
            wspec((1, mlp_dim)),                                   # ff_b1
            wspec((mlp_dim, dim)),                                 # ff_w2
            wspec((1, dim)),                                       # ff_b2
        ],
        out_specs=pl.BlockSpec((lpg, tile_rows, dim), lambda g, t: (g, t, 0)),
        out_shape=jax.ShapeDtypeStruct((depth, nb_rows, dim), jnp.float32),
        scratch_shapes=scratch,
        compiler_params=pltpu.CompilerParams(
            dimension_semantics=("parallel", "arbitrary"),
            vmem_limit_bytes=VMEM_LIMIT_BYTES),
    )(x, params["w_in"], params["w_res"], params["w_out"], params["b_out"],
      params["ln_g"], params["ln_b"], params["ff_w1"], params["ff_b1"],
      params["ff_w2"], params["ff_b2"])


# --------------------------------------------------------------------------------------
# Parameter construction (deterministic, matches module __init__ shapes)
# --------------------------------------------------------------------------------------

def _linear_params(key, fan_in, fan_out):
    k1, k2 = jax.random.split(key)
    bound = 1.0 / np.sqrt(fan_in)
    w = jax.random.uniform(k1, (fan_in, fan_out), jnp.float32, -bound, bound)
    b = jax.random.uniform(k2, (1, fan_out), jnp.float32, -bound, bound)
    return w, b


def _make_reservoir_matrix(rng, units, sparsity, spectral_radius, cycle_weight,
                           jump_weight, jump_size, connection_weight):
    W = np.zeros((units, units), np.float32)
    idx = np.arange(units)
    W[idx, (idx + 1) % units] = cycle_weight                      # cycle connections
    for i in range(0, units, jump_size):                          # bidirectional jumps
        j = (i + jump_size) % units
        W[i, j] += jump_weight
        W[j, i] += jump_weight
    mask = rng.random((units, units)) < sparsity                  # sparse random links
    signs = np.where(rng.random((units, units)) < 0.5, -1.0, 1.0)
    W = W + mask * signs * connection_weight
    np.fill_diagonal(W, 0.0)
    rho = float(np.max(np.abs(np.linalg.eigvals(W))))
    if rho > 0:
        W = W * (spectral_radius / rho)
    return W.astype(np.float32)


def init_params(seed, *, image_size, patch_size, channels, dim, depth, mlp_dim, num_classes,
                reservoir_units, input_scaling, spectral_radius, sparsity,
                cycle_weight, jump_weight, jump_size, connection_weight):
    key = jax.random.PRNGKey(seed)
    n_patches = (image_size // patch_size) ** 2
    patch_dim = channels * patch_size ** 2
    head_in = dim * n_patches
    classes_pad = ((num_classes + 127) // 128) * 128              # lane-dense head output

    keys = jax.random.split(key, 2 + depth)
    emb_w, emb_b = _linear_params(keys[0], patch_dim, dim)
    head_w, head_b = _linear_params(keys[1], head_in, num_classes)
    head_w = jnp.pad(head_w, ((0, 0), (0, classes_pad - num_classes)))
    head_b = jnp.pad(head_b, ((0, 0), (0, classes_pad - num_classes)))
    head_ln_g = jnp.ones((1, head_in), jnp.float32)
    head_ln_b = jnp.zeros((1, head_in), jnp.float32)
    # constants for the streaming-LN head decomposition
    head_c1 = head_ln_g @ head_w                                  # g @ W
    head_c2 = head_ln_b @ head_w + head_b                         # beta @ W + b

    rng = np.random.default_rng(seed)
    w_in_l, w_res_l, w_out_l, b_out_l = [], [], [], []
    ln_g_l, ln_b_l = [], []
    ff_w1_l, ff_b1_l, ff_w2_l, ff_b2_l = [], [], [], []
    for i in range(depth):
        lk = jax.random.split(keys[2 + i], 4)
        w_in_l.append(jax.random.uniform(lk[0], (dim, reservoir_units), jnp.float32,
                                         -float(input_scaling), float(input_scaling)))
        w_res_l.append(jnp.asarray(_make_reservoir_matrix(
            rng, reservoir_units, sparsity, spectral_radius,
            cycle_weight, jump_weight, jump_size, connection_weight)))
        w_out, b_out = _linear_params(lk[1], reservoir_units, dim)
        w_out_l.append(w_out); b_out_l.append(b_out)
        ln_g_l.append(jnp.ones((1, dim), jnp.float32))
        ln_b_l.append(jnp.zeros((1, dim), jnp.float32))
        ff_w1, ff_b1 = _linear_params(lk[2], dim, mlp_dim)
        ff_w2, ff_b2 = _linear_params(lk[3], mlp_dim, dim)
        ff_w1_l.append(ff_w1); ff_b1_l.append(ff_b1)
        ff_w2_l.append(ff_w2); ff_b2_l.append(ff_b2)

    bf16 = jnp.bfloat16
    return dict(
        emb_w=emb_w.astype(bf16), emb_b=emb_b,
        # depth-stacked layer params (matmul weights bf16, biases / LN params f32)
        w_in=jnp.stack(w_in_l).astype(bf16),
        w_res=jnp.stack(w_res_l).astype(bf16),
        w_out=jnp.stack(w_out_l).astype(bf16),
        b_out=jnp.stack(b_out_l),
        ln_g=jnp.stack(ln_g_l), ln_b=jnp.stack(ln_b_l),
        ff_w1=jnp.stack(ff_w1_l).astype(bf16), ff_b1=jnp.stack(ff_b1_l),
        ff_w2=jnp.stack(ff_w2_l).astype(bf16), ff_b2=jnp.stack(ff_b2_l),
        head_ln_g=head_ln_g, head_ln_b=head_ln_b,
        head_w=head_w.astype(bf16), head_c1=head_c1, head_c2=head_c2)


# --------------------------------------------------------------------------------------
# Forward pass (dropout p=0.0 / eval mode -> identity)
# --------------------------------------------------------------------------------------

def parallel_reservoir_forward(img, params, *, patch_size, leaky, num_classes, tile_n=None):
    b, c, H, W = img.shape
    p = patch_size
    h, w = H // p, W // p
    n = h * w
    b_pad = ((b + 7) // 8) * 8          # sublane-pad batch -> unmasked per-timestep slabs

    # 'b c (h p1) (w p2) -> (h w) b (p1 p2 c)'  (time-major), pad batch, flatten rows.
    patches = (img.reshape(b, c, h, p, w, p)
                  .transpose(2, 4, 0, 3, 5, 1)
                  .reshape(n, b, p * p * c))
    patches = jnp.pad(patches, ((0, 0), (0, b_pad - b), (0, 0)))
    patches = patches.reshape(n * b_pad, p * p * c).astype(jnp.bfloat16)

    # patch embedding: Linear(patch_dim -> dim), row-tiled, bf16 output
    x = linear_pallas(patches, params["emb_w"], params["emb_b"])          # (n*b_pad, dim) bf16
    dim = x.shape[-1]

    # all parallel reservoirs + Residual(PreNorm(FeedForward)) in one kernel; average branches
    per_depth = reservoir_stack_pallas(x, params, n=n, b_pad=b_pad,
                                       leaky=leaky, tile_n=tile_n)        # (depth, n*b_pad, dim)
    total = jnp.mean(per_depth, axis=0)                                   # (n*b_pad, dim) f32

    # back to batch-major, flatten (n*dim), fused streaming LayerNorm + mlp_head
    xb = total.reshape(n, b_pad, dim).transpose(1, 0, 2).reshape(b_pad, n * dim)
    logits_pad = head_pallas(xb, params["head_ln_g"], params["head_w"],
                             params["head_c1"], params["head_c2"])
    return logits_pad[:b, :num_classes]


# --------------------------------------------------------------------------------------

if __name__ == "__main__":
    # small, self-consistent shapes
    image_size, patch_size, channels = 16, 4, 3
    dim, depth, mlp_dim, num_classes = 32, 2, 64, 10
    reservoir_units = 128
    hp = dict(input_scaling=1.0, spectral_radius=0.9, leaky=1.0, sparsity=0.05,
              cycle_weight=0.05, jump_weight=0.5, jump_size=7, connection_weight=0.08)

    params = init_params(
        0, image_size=image_size, patch_size=patch_size, channels=channels,
        dim=dim, depth=depth, mlp_dim=mlp_dim, num_classes=num_classes,
        reservoir_units=reservoir_units, input_scaling=hp["input_scaling"],
        spectral_radius=hp["spectral_radius"], sparsity=hp["sparsity"],
        cycle_weight=hp["cycle_weight"], jump_weight=hp["jump_weight"],
        jump_size=hp["jump_size"], connection_weight=hp["connection_weight"])

    img = jax.random.normal(jax.random.PRNGKey(0),
                            (2, channels, image_size, image_size), jnp.float32)

    # tile_n=8 -> 2 time tiles of the 16 patches, exercising the carried-state path.
    logits = parallel_reservoir_forward(img, params, patch_size=patch_size,
                                        leaky=hp["leaky"], num_classes=num_classes,
                                        tile_n=8)
    logits = jax.block_until_ready(logits)
    assert logits.shape == (2, num_classes) and logits.dtype == jnp.float32
    assert bool(jnp.all(jnp.isfinite(logits)))
    print("KERNEL_OK")
</pallas_src>

<mosaic_0001>
module attributes {stable_mosaic.version = 11 : i64} {
  func.func @_linear_kernel(%arg0: i32, %arg1: memref<128x48xbf16, #tpu.memory_space<vmem>>, %arg2: memref<48x32xbf16, #tpu.memory_space<vmem>>, %arg3: memref<1x32xf32, #tpu.memory_space<vmem>>, %arg4: memref<128x32xbf16, #tpu.memory_space<vmem>>) attributes {dimension_semantics = [#tpu.dimension_semantics<parallel>], iteration_bounds = array<i64: 1>, scalar_prefetch = 0 : i64, scratch_operands = 0 : i64, tpu.core_type = #tpu.core_type<tc>, window_params = [{transform_indices = @transform_0, window_bounds = array<i64: 128, 48>}, {pipeline_mode = #tpu.pipeline_mode<synchronous>, transform_indices = @transform_1, window_bounds = array<i64: 48, 32>}, {pipeline_mode = #tpu.pipeline_mode<synchronous>, transform_indices = @transform_2, window_bounds = array<i64: 1, 32>}, {transform_indices = @transform_3, window_bounds = array<i64: 128, 32>}]} {
    %c0 = arith.constant 0 : index
    %c0_0 = arith.constant 0 : index
    %0 = vector.load %arg1[%c0, %c0_0] : memref<128x48xbf16, #tpu.memory_space<vmem>>, vector<128x48xbf16>
    %c0_1 = arith.constant 0 : index
    %c0_2 = arith.constant 0 : index
    %1 = vector.load %arg2[%c0_1, %c0_2] : memref<48x32xbf16, #tpu.memory_space<vmem>>, vector<48x32xbf16>
    %cst = arith.constant dense<0.000000e+00> : vector<128x32xf32>
    %2 = tpu.matmul %0, %1, %cst {dimension_numbers = #tpu.dot_dimension_numbers<[1], [0], [0], [1], [0, 0, 1, 1], [], []>} : vector<128x48xbf16>, vector<48x32xbf16>, vector<128x32xf32> -> vector<128x32xf32>
    %c0_3 = arith.constant 0 : index
    %c0_4 = arith.constant 0 : index
    %3 = vector.load %arg3[%c0_3, %c0_4] : memref<1x32xf32, #tpu.memory_space<vmem>>, vector<1x32xf32>
    %4 = vector.broadcast %3 : vector<1x32xf32> to vector<128x32xf32>
    %5 = arith.addf %2, %4 : vector<128x32xf32>
    %6 = arith.truncf %5 : vector<128x32xf32> to vector<128x32xbf16>
    %c0_5 = arith.constant 0 : index
    %c0_6 = arith.constant 0 : index
    %7 = vector.load %arg4[%c0_5, %c0_6] : memref<128x32xbf16, #tpu.memory_space<vmem>>, vector<128x32xbf16>
    tpu.vector_store %arg4[%c0_5, %c0_6], %6 {strides = array<i32>} : memref<128x32xbf16, #tpu.memory_space<vmem>>, vector<128x32xbf16>,
    return
  }
  func.func @transform_0(%arg0: i32) -> (i32, i32) {
    %c0_i32 = arith.constant 0 : i32
    %c0_i32_0 = arith.constant 0 : i32
    return %arg0, %c0_i32 : i32, i32
  }
  func.func @transform_1(%arg0: i32) -> (i32, i32) {
    %c0_i32 = arith.constant 0 : i32
    %c0_i32_0 = arith.constant 0 : i32
    %c0_i32_1 = arith.constant 0 : i32
    return %c0_i32, %c0_i32_0 : i32, i32
  }
  func.func @transform_2(%arg0: i32) -> (i32, i32) {
    %c0_i32 = arith.constant 0 : i32
    %c0_i32_0 = arith.constant 0 : i32
    %c0_i32_1 = arith.constant 0 : i32
    return %c0_i32, %c0_i32_0 : i32, i32
  }
  func.func @transform_3(%arg0: i32) -> (i32, i32) {
    %c0_i32 = arith.constant 0 : i32
    %c0_i32_0 = arith.constant 0 : i32
    return %arg0, %c0_i32 : i32, i32
  }
}

</mosaic_0001>

<bundles_post_ra>
// kernel: tpu_custom_call.1
= control target key start
LH: loop header
LB: loop body
LE: loop exit
PB: predicated region body
PF: predicated region fallthrough
CT: control target
= control target key end

     0   :  { %vm102_vm0 = vcmask 392192   ;;  %vm288_vm1 = vcmask 257024   ;;  %s539_s1 = inlined_call_operand.vmem [shape: bf16[48,32], index: 1, kind: input, shape index: {}]   ;;  %s540_s0 = inlined_call_operand.vmem [shape: bf16[128,48], index: 0, kind: input, shape index: {}]   ;;  %s541_s2 = inlined_call_operand.vmem [shape: f32[1,32], index: 2, kind: input, shape index: {}]   ;;  %s542_s3 = inlined_call_operand.vmem [shape: bf16[128,32], index: 3, kind: output, shape index: {}]  }
   0x1   :  { %v400_v0 = vld [vmem:[%s539_s1 + $0x10] sm:$0xff]   ;;  %v401_v1 = vld [vmem:[%s539_s1 + $0x8] sm:$0xff]   ;;  %v402_v2 = vld [vmem:[%s539_s1] sm:$0xff]  }
   0x2   :  { %372 = vmatprep.subr.bf16.mxu0 %v400_v0  ;;  %394 = vmatprep.subr.bf16.mxu1 %v400_v0  ;;  %v403_v3 = vld [vmem:[%s540_s0] sm:$0xff]   ;;  %v405_v5 = vld [vmem:[%s540_s0 + $0x8] sm:$0xff]   ;;  %v407_v7 = vld [vmem:[%s540_s0 + $0x10] sm:$0xff]  }
   0x3   :  { %373 = vmatpush3.bf16.msra.mxu0 %v400_v0  ;;  %397 = vmatpush3.bf16.msra.mxu1 %v400_v0  ;;  %v404_v4 = vld [vmem:[%s540_s0 + $0x20] sm:$0xff]   ;;  %v406_v6 = vld [vmem:[%s540_s0 + $0x28] sm:$0xff]   ;;  %v408_v8 = vld [vmem:[%s540_s0 + $0x30] sm:$0xff]  }
   0x4   :  { %374 = vmatprep.subr.bf16.mxu0 %v401_v1  ;;  %395 = vmatprep.subr.bf16.mxu1 %v401_v1  ;;  %v409_v9 = vld [vmem:[%s540_s0 + $0x18] sm:$0xff]   ;;  %v309_v11 = vld [vmem:[%s541_s2] ss:$0 sm:$0xff] }
   0x5   :  { %378 = vmatprep.mubr.msk.bf16.mxu0 %vm102_vm0, %v403_v3  ;;  %386 = vmatprep.mubr.msk.bf16.mxu1 %vm102_vm0, %v404_v4  ;;  %v410_v10 = vld [vmem:[%s540_s0 + $0x38] sm:$0xff]  }
   0x7   :  { %375 = vmatpush3.bf16.msra.mxu0 %v401_v1  ;;  %398 = vmatpush3.bf16.msra.mxu1 %v401_v1 }
   0x8   :  { %376 = vmatprep.subr.bf16.mxu0 %v402_v2  ;;  %396 = vmatprep.subr.bf16.mxu1 %v402_v2 }
   0xb   :  { %377 = vmatpush3.bf16.msra.mxu0 %v402_v2  ;;  %399 = vmatpush3.bf16.msra.mxu1 %v402_v2 }
   0xe   :  { %379 = vmatmul.mubr.msk.bf16.vlgmr.msra.gmra.mxu0 %vm102_vm0, %v405_v5  ;;  %387 = vmatmul.mubr.msk.bf16.vlgmr.msra.gmra.mxu1 %vm102_vm0, %v406_v6 }
   0xf   :  { %382 = vmatprep.mubr.msk.bf16.mxu0 %vm102_vm0, %v407_v7  ;;  %390 = vmatprep.mubr.msk.bf16.mxu1 %vm102_vm0, %v408_v8 }
  0x16   :  { %383 = vmatmul.mubr.msk.bf16.gmra.mxu0 %vm102_vm0, %v409_v9  ;;  %391 = vmatmul.mubr.msk.bf16.gmra.mxu1 %vm102_vm0, %v410_v10 }
  0xce   :  { %v380_v12 = vpop.f32.mrf.mxu0  ;;  %v388_v13 = vpop.f32.mrf.mxu1 }
  0xcf   :  { %v170_v14 = vadd.f32 %v380_v12, %v309_v11  ;;  %v202_v15 = vadd.f32 %v388_v13, %v309_v11 }
  0xd0   :  { %v161_v16 = vpop.f32.mrf.mxu0  ;;  %v193_v17 = vpop.f32.mrf.mxu1 }
  0xd1   :  { %v347_v18 = vpack.c.bf16 %v170_v14, %v170_v14  ;;  %v355_v19 = vpack.c.bf16 %v202_v15, %v202_v15  ;;  %v162_v20 = vadd.f32 %v309_v11, %v161_v16  ;;  %v194_v21 = vadd.f32 %v309_v11, %v193_v17 }
  0xd2   :  { %v381_v22 = vpop.f32.mrf.mxu0  ;;  %v389_v23 = vpop.f32.mrf.mxu1 }
  0xd3   :  { %291 = vst.msk [vmem:[%s542_s3 + $0x8] sm:$0xf] %vm288_vm1, %v347_v18  ;;  %299 = vst.msk [vmem:[%s542_s3 + $0x28] sm:$0xf] %vm288_vm1, %v355_v19  ;;  %v345_v24 = vpack.c.bf16 %v162_v20, %v162_v20  ;;  %v353_v25 = vpack.c.bf16 %v194_v21, %v194_v21  ;;  %v173_v26 = vadd.f32 %v381_v22, %v309_v11 }
  0xd4   :  { %v205_v27 = vadd.f32 %v389_v23, %v309_v11  ;;  %v164_v28 = vpop.f32.mrf.mxu0  ;;  %v196_v29 = vpop.f32.mrf.mxu1 }
  0xd5   :  { %289 = vst.msk [vmem:[%s542_s3] sm:$0xf] %vm288_vm1, %v345_v24  ;;  %297 = vst.msk [vmem:[%s542_s3 + $0x20] sm:$0xf] %vm288_vm1, %v353_v25  ;;  %v348_v30 = vpack.c.bf16 %v173_v26, %v173_v26  ;;  %v165_v32 = vadd.f32 %v309_v11, %v164_v28  ;;  %v197_v33 = vadd.f32 %v309_v11, %v196_v29 }
  0xd6   :  { %v356_v31 = vpack.c.bf16 %v205_v27, %v205_v27  ;;  %v384_v34 = vpop.f32.mrf.mxu0  ;;  %v392_v35 = vpop.f32.mrf.mxu1 }
  0xd7   :  { %292 = vst.msk [vmem:[%s542_s3 + $0xc] sm:$0xf] %vm288_vm1, %v348_v30  ;;  %v346_v36 = vpack.c.bf16 %v165_v32, %v165_v32  ;;  %v354_v37 = vpack.c.bf16 %v197_v33, %v197_v33  ;;  %v186_v38 = vadd.f32 %v384_v34, %v309_v11  ;;  %v218_v39 = vadd.f32 %v392_v35, %v309_v11 }
  0xd8   :  { %300 = vst.msk [vmem:[%s542_s3 + $0x2c] sm:$0xf] %vm288_vm1, %v356_v31  ;;  %v177_v40 = vpop.f32.mrf.mxu0  ;;  %v209_v41 = vpop.f32.mrf.mxu1 }
  0xd9   :  { %290 = vst.msk [vmem:[%s542_s3 + $0x4] sm:$0xf] %vm288_vm1, %v346_v36  ;;  %298 = vst.msk [vmem:[%s542_s3 + $0x24] sm:$0xf] %vm288_vm1, %v354_v37  ;;  %v351_v42 = vpack.c.bf16 %v186_v38, %v186_v38  ;;  %v359_v43 = vpack.c.bf16 %v218_v39, %v218_v39  ;;  %v178_v44 = vadd.f32 %v309_v11, %v177_v40 }
  0xda   :  { %v210_v45 = vadd.f32 %v309_v11, %v209_v41  ;;  %v385_v46 = vpop.f32.mrf.mxu0  ;;  %v393_v47 = vpop.f32.mrf.mxu1 }
  0xdb   :  { %295 = vst.msk [vmem:[%s542_s3 + $0x18] sm:$0xf] %vm288_vm1, %v351_v42  ;;  %303 = vst.msk [vmem:[%s542_s3 + $0x38] sm:$0xf] %vm288_vm1, %v359_v43  ;;  %v349_v48 = vpack.c.bf16 %v178_v44, %v178_v44  ;;  %v189_v50 = vadd.f32 %v385_v46, %v309_v11  ;;  %v221_v51 = vadd.f32 %v393_v47, %v309_v11 }
  0xdc   :  { %v357_v49 = vpack.c.bf16 %v210_v45, %v210_v45  ;;  %v180_v52 = vpop.f32.mrf.mxu0  ;;  %v212_v53 = vpop.f32.mrf.mxu1 }
  0xdd   :  { %293 = vst.msk [vmem:[%s542_s3 + $0x10] sm:$0xf] %vm288_vm1, %v349_v48  ;;  %v352_v54 = vpack.c.bf16 %v189_v50, %v189_v50  ;;  %v360_v55 = vpack.c.bf16 %v221_v51, %v221_v51  ;;  %v181_v56 = vadd.f32 %v309_v11, %v180_v52  ;;  %v213_v57 = vadd.f32 %v309_v11, %v212_v53 }
  0xde   :  { %301 = vst.msk [vmem:[%s542_s3 + $0x30] sm:$0xf] %vm288_vm1, %v357_v49 }
  0xdf   :  { %296 = vst.msk [vmem:[%s542_s3 + $0x1c] sm:$0xf] %vm288_vm1, %v352_v54  ;;  %304 = vst.msk [vmem:[%s542_s3 + $0x3c] sm:$0xf] %vm288_vm1, %v360_v55  ;;  %v350_v58 = vpack.c.bf16 %v181_v56, %v181_v56  ;;  %v358_v59 = vpack.c.bf16 %v213_v57, %v213_v57 }
  0xe1   :  { %294 = vst.msk [vmem:[%s542_s3 + $0x14] sm:$0xf] %vm288_vm1, %v350_v58  ;;  %302 = vst.msk [vmem:[%s542_s3 + $0x34] sm:$0xf] %vm288_vm1, %v358_v59 }

</bundles_post_ra>
